<compile_context>
chip_gen: v6e
topology: v6e:2x2x1
jax: 0.10.0
libtpu: 0.0.40
codegen_flags: <defaults>
</compile_context>

<pallas_src>
import jax
import jax.numpy as jnp
from jax.experimental import pallas as pl
from jax.experimental.pallas import tpu as pltpu

BN_EPS = 1e-5
LANE = 128
SUBLANE = 8


def _round_up(x, m):
    return ((x + m - 1) // m) * m


def _vmem_capacity_bytes():
    """VMEM capacity of the local TPU (conservative fallback = v7x 64 MiB)."""
    try:
        cap = int(pltpu.get_tpu_info().vmem_capacity_bytes)
        if cap > 0:
            return cap
    except Exception:
        pass
    return 64 * 1024 * 1024


def _choose_tiles(B, C, HW, itemsize, budget_bytes):
    """Pick (tb, tc) so one x tile (tb, tc, HW) fits budget_bytes of VMEM.

    Accounts for VMEM layout padding (HW padded up to a lane multiple, tc up
    to a sublane multiple).  Channel tiles must divide C and be sublane
    aligned (multiple of 8) unless they are the full dim; batch tiles must
    divide B (no multiple-of-8 requirement -- the kernel handles unaligned
    row offsets).  Picks the largest tile that fits (amortizes the ~0.35 us
    per-grid-step overhead).
    """
    hw_pad = _round_up(HW, LANE)

    def tile_bytes(tb, tc):
        return tb * _round_up(tc, SUBLANE) * hw_pad * itemsize

    c_cands = [c for c in range(C, 0, -1)
               if C % c == 0 and (c % SUBLANE == 0 or c == C)]
    b_cands = [b for b in range(B, 0, -1) if B % b == 0]

    best = None
    for tb in b_cands:
        for tc in c_cands:
            sz = tile_bytes(tb, tc)
            if sz <= budget_bytes:
                key = (sz, tc, tb)
                if best is None or key > best[0]:
                    best = (key, tb, tc)
    if best is not None:
        return best[1], best[2]
    # Nothing fits the budget: fall back to the smallest legal tile.
    return 1, c_cands[-1]


def _make_kernel(nb, nc, tb, tc, w_resident):
    def kernel(x_ref, w_ref, gamma_ref, beta_ref, out_ref, acc_ref):
        # x_ref:     (tb, tc, HW)       input tile; spatial dims on the lane axis
        # w_ref:     (C, O_pad) resident (or (tc, O_pad) streamed tile)
        # gamma_ref: (1, O_pad)         BN weight
        # beta_ref:  (1, O_pad)         BN bias
        # out_ref:   (B, O_pad)         resident output block (same block every step)
        # acc_ref:   (tb, O_pad) f32    per-batch-tile accumulator (VMEM scratch)
        i = pl.program_id(0)   # batch tile
        k = pl.program_id(1)   # channel tile (reduction axis, innermost)

        # Backbone tail: spatial sum over HW (the 1/HW pooling scale is folded
        # into w) with f32 accumulation, then the partial fc contraction (MXU).
        pooled = jnp.sum(x_ref[...], axis=-1, dtype=jnp.float32)      # (tb, tc)
        if w_resident and nc > 1:
            start = k * tc
            if tc % SUBLANE == 0:
                start = pl.multiple_of(start, SUBLANE)
            w_blk = w_ref[pl.ds(start, tc), :]
        else:
            w_blk = w_ref[...]
        partial = jnp.dot(pooled, w_blk.astype(jnp.float32),
                          preferred_element_type=jnp.float32)         # (tb, O_pad)

        # First channel step stores directly; later steps accumulate.
        @pl.when(k == 0)
        def _store_first():
            acc_ref[...] = partial

        if nc > 1:
            @pl.when(k != 0)
            def _accumulate():
                acc_ref[...] += partial

        # Batch tile finished: park its pre-BN features in the resident output.
        # (fc bias intentionally omitted: BN's per-feature mean subtraction
        #  cancels any constant per-feature bias exactly.)
        @pl.when(k == nc - 1)
        def _store_tile():
            if nb == 1:
                out_ref[...] = acc_ref[...].astype(out_ref.dtype)
            else:
                row = i * tb
                if tb % SUBLANE == 0:
                    row = pl.multiple_of(row, SUBLANE)
                out_ref[pl.ds(row, tb), :] = acc_ref[...].astype(out_ref.dtype)

        # Epilogue on the very last grid step: BatchNorm1d with whole-batch
        # statistics as one fused scale/shift.
        @pl.when((i == nb - 1) & (k == nc - 1))
        def _batchnorm():
            feat = out_ref[...]                                        # (B, O_pad)
            mean = jnp.mean(feat, axis=0, keepdims=True)
            centered = feat - mean
            var = jnp.mean(centered * centered, axis=0, keepdims=True)
            s = gamma_ref[...] * jax.lax.rsqrt(var + BN_EPS)           # EUP rsqrt
            out_ref[...] = (centered * s + beta_ref[...]).astype(out_ref.dtype)

    return kernel


def encoder_cnn_forward(images, fc_w, fc_b, bn_gamma, bn_beta):
    """images: (B, C, H, W); fc_w: (O, C) (PyTorch layout); fc_b/gamma/beta: (O,).

    Returns the (B, O) EncoderCNN forward output: global-average-pool backbone
    stand-in -> fc -> BatchNorm1d with training-mode batch statistics.
    fc_b is accepted for API parity but not fed to the kernel: BatchNorm's
    per-feature mean subtraction cancels a constant per-feature bias exactly.
    """
    del fc_b  # cancelled exactly by BN's batch-mean subtraction
    B, C, H, W = images.shape
    O = fc_w.shape[0]
    HW = H * W
    O_pad = _round_up(O, LANE)
    pad = O_pad - O

    # Consume NCHW directly: (B, C, H, W) -> (B, C, HW) is a free, contiguous
    # reshape (no extra HBM pass); pooling reduces the lane (HW) axis in-kernel.
    x = images.reshape(B, C, HW)

    # Fold the 1/HW pooling scale into the fc weight; pad the feature dim to a
    # lane-dense multiple of 128 (padded columns all-zero, sliced off below).
    w = fc_w.T.astype(jnp.float32) * (1.0 / float(HW))
    w = jnp.pad(w, ((0, 0), (0, pad)))
    g2 = jnp.pad(bn_gamma.astype(jnp.float32), (0, pad)).reshape(1, O_pad)
    be2 = jnp.pad(bn_beta.astype(jnp.float32), (0, pad)).reshape(1, O_pad)

    itemsize = x.dtype.itemsize
    vmem_cap = _vmem_capacity_bytes()
    # Generation-aware x-tile budget: ~1/8 of VMEM per buffer (double-buffered
    # => ~1/4 of VMEM for x), i.e. ~8 MiB on v7x, ~16 MiB on v5e/v6e.
    budget = vmem_cap // 8
    tb, tc = _choose_tiles(B, C, HW, itemsize, budget)
    nb, nc = B // tb, C // tc

    # Keep the whole fc weight resident in VMEM (DMA'd from HBM once) unless it
    # is too large, in which case stream (tc, O_pad) tiles per channel step.
    w_bytes = _round_up(C, SUBLANE) * O_pad * 4
    w_resident = w_bytes <= vmem_cap // 3

    hw_pad = _round_up(HW, LANE)
    est = (2 * tb * _round_up(tc, SUBLANE) * hw_pad * itemsize        # x, 2 bufs
           + (w_bytes if w_resident
              else 2 * _round_up(tc, SUBLANE) * O_pad * 4)            # weight
           + 2 * _round_up(B, SUBLANE) * O_pad * 4                    # out block
           + _round_up(tb, SUBLANE) * O_pad * 4                       # acc scratch
           + 4 * SUBLANE * O_pad * 4)                                 # gamma/beta
    # Cap well below physical VMEM to leave Mosaic internal-scratch headroom
    # (never request the full 64 MiB on v7x).
    vmem_limit = int(min(0.85 * vmem_cap,
                         max(32 * 1024 * 1024, 1.5 * est + (4 << 20))))

    if w_resident:
        w_spec = pl.BlockSpec((C, O_pad), lambda i, k: (0, 0))
    else:
        w_spec = pl.BlockSpec((tc, O_pad), lambda i, k: (k, 0))

    grid_spec = pltpu.PrefetchScalarGridSpec(
        num_scalar_prefetch=0,
        grid=(nb, nc),                             # reduction (channel) axis last
        in_specs=[
            pl.BlockSpec((tb, tc, HW), lambda i, k: (i, k, 0)),
            w_spec,
            pl.BlockSpec((1, O_pad), lambda i, k: (0, 0)),
            pl.BlockSpec((1, O_pad), lambda i, k: (0, 0)),
        ],
        out_specs=pl.BlockSpec((B, O_pad), lambda i, k: (0, 0)),
        scratch_shapes=[pltpu.VMEM((tb, O_pad), jnp.float32)],
    )

    out_padded = pl.pallas_call(
        _make_kernel(nb, nc, tb, tc, w_resident),
        out_shape=jax.ShapeDtypeStruct((B, O_pad), jnp.float32),
        grid_spec=grid_spec,
        compiler_params=pltpu.CompilerParams(
            # Every step feeds the single resident (B, O_pad) output block (BN
            # needs whole-batch statistics), so neither grid axis can be
            # megacore-parallel.
            dimension_semantics=("arbitrary", "arbitrary"),
            vmem_limit_bytes=vmem_limit,
        ),
    )(x, w, g2, be2)

    return out_padded[:, :O]


def _reference(images, fc_w, fc_b, bn_gamma, bn_beta):
    B, C = images.shape[0], images.shape[1]
    pooled = jnp.mean(images.reshape(B, C, -1), axis=-1)
    feat = pooled @ fc_w.T + fc_b
    mean = jnp.mean(feat, axis=0, keepdims=True)
    var = jnp.mean((feat - mean) ** 2, axis=0, keepdims=True)
    return bn_gamma * (feat - mean) / jnp.sqrt(var + BN_EPS) + bn_beta


if __name__ == "__main__":
    # Small synthetic shapes consistent with the module's forward:
    # batch=2, backbone feature channels (fc.in_features)=64, spatial=16x16,
    # output_size=32.
    B, C, H, W = 2, 64, 16, 16
    OUTPUT_SIZE = 32

    key = jax.random.PRNGKey(0)
    k_img, k_w = jax.random.split(key)

    images = jax.random.normal(k_img, (B, C, H, W), dtype=jnp.float32)

    # init_weights(): fc.weight ~ N(0, 0.02), fc.bias = 0.
    fc_w = 0.02 * jax.random.normal(k_w, (OUTPUT_SIZE, C), dtype=jnp.float32)
    fc_b = jnp.zeros((OUTPUT_SIZE,), dtype=jnp.float32)

    # BatchNorm1d default affine params.
    bn_gamma = jnp.ones((OUTPUT_SIZE,), dtype=jnp.float32)
    bn_beta = jnp.zeros((OUTPUT_SIZE,), dtype=jnp.float32)

    out = encoder_cnn_forward(images, fc_w, fc_b, bn_gamma, bn_beta)
    out = jax.block_until_ready(out)

    ref = _reference(images, fc_w, fc_b, bn_gamma, bn_beta)
    assert out.shape == (B, OUTPUT_SIZE)
    assert jnp.allclose(out, ref, atol=2e-4, rtol=2e-4), "mismatch vs reference"

    print("KERNEL_OK")
</pallas_src>

<mosaic_0001>
module attributes {stable_mosaic.version = 11 : i64} {
  func.func @kernel(%arg0: i32, %arg1: i32, %arg2: memref<2x64x256xf32, #tpu.memory_space<vmem>>, %arg3: memref<64x128xf32, #tpu.memory_space<vmem>>, %arg4: memref<1x128xf32, #tpu.memory_space<vmem>>, %arg5: memref<1x128xf32, #tpu.memory_space<vmem>>, %arg6: memref<2x128xf32, #tpu.memory_space<vmem>>, %arg7: memref<2x128xf32, #tpu.memory_space<vmem>>) attributes {dimension_semantics = [#tpu.dimension_semantics<arbitrary>, #tpu.dimension_semantics<arbitrary>], iteration_bounds = array<i64: 1, 1>, scalar_prefetch = 0 : i64, scratch_operands = 1 : i64, tpu.core_type = #tpu.core_type<tc>, window_params = [{transform_indices = @transform_0, window_bounds = array<i64: 2, 64, 256>}, {pipeline_mode = #tpu.pipeline_mode<synchronous>, transform_indices = @transform_1, window_bounds = array<i64: 64, 128>}, {pipeline_mode = #tpu.pipeline_mode<synchronous>, transform_indices = @transform_2, window_bounds = array<i64: 1, 128>}, {pipeline_mode = #tpu.pipeline_mode<synchronous>, transform_indices = @transform_3, window_bounds = array<i64: 1, 128>}, {pipeline_mode = #tpu.pipeline_mode<synchronous>, transform_indices = @transform_4, window_bounds = array<i64: 2, 128>}]} {
    %c0 = arith.constant 0 : index
    %c0_0 = arith.constant 0 : index
    %c0_1 = arith.constant 0 : index
    %0 = vector.load %arg2[%c0, %c0_0, %c0_1] : memref<2x64x256xf32, #tpu.memory_space<vmem>>, vector<2x64x256xf32>
    %cst = arith.constant dense<0.000000e+00> : vector<2x64xf32>
    %1 = vector.multi_reduction <add>, %0, %cst [2] : vector<2x64x256xf32> to vector<2x64xf32>
    %c0_2 = arith.constant 0 : index
    %c0_3 = arith.constant 0 : index
    %2 = vector.load %arg3[%c0_2, %c0_3] : memref<64x128xf32, #tpu.memory_space<vmem>>, vector<64x128xf32>
    %cst_4 = arith.constant dense<0.000000e+00> : vector<2x128xf32>
    %3 = tpu.matmul %1, %2, %cst_4 {dimension_numbers = #tpu.dot_dimension_numbers<[1], [0], [0], [1], [0, 0, 1, 1], [], []>} : vector<2x64xf32>, vector<64x128xf32>, vector<2x128xf32> -> vector<2x128xf32>
    %c0_i32 = arith.constant 0 : i32
    %4 = arith.cmpi eq, %arg1, %c0_i32 : i32
    %5 = arith.extui %4 : i1 to i32
    %c0_i32_5 = arith.constant 0 : i32
    %6 = arith.cmpi ne, %5, %c0_i32_5 : i32
    scf.if %6 {
      %c0_11 = arith.constant 0 : index
      %c0_12 = arith.constant 0 : index
      %15 = vector.load %arg7[%c0_11, %c0_12] : memref<2x128xf32, #tpu.memory_space<vmem>>, vector<2x128xf32>
      tpu.vector_store %arg7[%c0_11, %c0_12], %3 {strides = array<i32>} : memref<2x128xf32, #tpu.memory_space<vmem>>, vector<2x128xf32>,
    } else {
    }
    %c0_i32_6 = arith.constant 0 : i32
    %7 = arith.cmpi eq, %arg1, %c0_i32_6 : i32
    %8 = arith.extui %7 : i1 to i32
    %c0_i32_7 = arith.constant 0 : i32
    %9 = arith.cmpi ne, %8, %c0_i32_7 : i32
    scf.if %9 {
      %c0_11 = arith.constant 0 : index
      %c0_12 = arith.constant 0 : index
      %15 = vector.load %arg7[%c0_11, %c0_12] : memref<2x128xf32, #tpu.memory_space<vmem>>, vector<2x128xf32>
      %c0_13 = arith.constant 0 : index
      %c0_14 = arith.constant 0 : index
      %16 = vector.load %arg6[%c0_13, %c0_14] : memref<2x128xf32, #tpu.memory_space<vmem>>, vector<2x128xf32>
      tpu.vector_store %arg6[%c0_13, %c0_14], %15 {strides = array<i32>} : memref<2x128xf32, #tpu.memory_space<vmem>>, vector<2x128xf32>,
    } else {
    }
    %c0_i32_8 = arith.constant 0 : i32
    %10 = arith.cmpi eq, %arg0, %c0_i32_8 : i32
    %c0_i32_9 = arith.constant 0 : i32
    %11 = arith.cmpi eq, %arg1, %c0_i32_9 : i32
    %12 = arith.andi %10, %11 : i1
    %13 = arith.extui %12 : i1 to i32
    %c0_i32_10 = arith.constant 0 : i32
    %14 = arith.cmpi ne, %13, %c0_i32_10 : i32
    scf.if %14 {
      %c0_11 = arith.constant 0 : index
      %c0_12 = arith.constant 0 : index
      %15 = vector.load %arg6[%c0_11, %c0_12] : memref<2x128xf32, #tpu.memory_space<vmem>>, vector<2x128xf32>
      %cst_13 = arith.constant dense<0.000000e+00> : vector<128xf32>
      %16 = vector.multi_reduction <add>, %15, %cst_13 [0] : vector<2x128xf32> to vector<128xf32>
      %17 = vector.shape_cast %16 : vector<128xf32> to vector<1x128xf32>
      %cst_14 = arith.constant 2.000000e+00 : f32
      %18 = vector.broadcast %cst_14 : f32 to vector<1x128xf32>
      %19 = arith.divf %17, %18 : vector<1x128xf32>
      %20 = vector.broadcast %19 : vector<1x128xf32> to vector<2x128xf32>
      %21 = arith.subf %15, %20 : vector<2x128xf32>
      %22 = arith.mulf %21, %21 : vector<2x128xf32>
      %cst_15 = arith.constant dense<0.000000e+00> : vector<128xf32>
      %23 = vector.multi_reduction <add>, %22, %cst_15 [0] : vector<2x128xf32> to vector<128xf32>
      %24 = vector.shape_cast %23 : vector<128xf32> to vector<1x128xf32>
      %cst_16 = arith.constant 2.000000e+00 : f32
      %25 = vector.broadcast %cst_16 : f32 to vector<1x128xf32>
      %26 = arith.divf %24, %25 : vector<1x128xf32>
      %c0_17 = arith.constant 0 : index
      %c0_18 = arith.constant 0 : index
      %27 = vector.load %arg4[%c0_17, %c0_18] : memref<1x128xf32, #tpu.memory_space<vmem>>, vector<1x128xf32>
      %cst_19 = arith.constant 9.99999974E-6 : f32
      %28 = vector.broadcast %cst_19 : f32 to vector<1x128xf32>
      %29 = arith.addf %26, %28 : vector<1x128xf32>
      %30 = math.rsqrt %29 : vector<1x128xf32>
      %31 = arith.mulf %27, %30 : vector<1x128xf32>
      %32 = vector.broadcast %31 : vector<1x128xf32> to vector<2x128xf32>
      %33 = arith.mulf %21, %32 : vector<2x128xf32>
      %c0_20 = arith.constant 0 : index
      %c0_21 = arith.constant 0 : index
      %34 = vector.load %arg5[%c0_20, %c0_21] : memref<1x128xf32, #tpu.memory_space<vmem>>, vector<1x128xf32>
      %35 = vector.broadcast %34 : vector<1x128xf32> to vector<2x128xf32>
      %36 = arith.addf %33, %35 : vector<2x128xf32>
      %c0_22 = arith.constant 0 : index
      %c0_23 = arith.constant 0 : index
      %37 = vector.load %arg6[%c0_22, %c0_23] : memref<2x128xf32, #tpu.memory_space<vmem>>, vector<2x128xf32>
      tpu.vector_store %arg6[%c0_22, %c0_23], %36 {strides = array<i32>} : memref<2x128xf32, #tpu.memory_space<vmem>>, vector<2x128xf32>,
    } else {
    }
    return
  }
  func.func @transform_0(%arg0: i32, %arg1: i32) -> (i32, i32, i32) {
    %c0_i32 = arith.constant 0 : i32
    %c0_i32_0 = arith.constant 0 : i32
    return %arg0, %arg1, %c0_i32 : i32, i32, i32
  }
  func.func @transform_1(%arg0: i32, %arg1: i32) -> (i32, i32) {
    %c0_i32 = arith.constant 0 : i32
    %c0_i32_0 = arith.constant 0 : i32
    %c0_i32_1 = arith.constant 0 : i32
    return %c0_i32, %c0_i32_0 : i32, i32
  }
  func.func @transform_2(%arg0: i32, %arg1: i32) -> (i32, i32) {
    %c0_i32 = arith.constant 0 : i32
    %c0_i32_0 = arith.constant 0 : i32
    %c0_i32_1 = arith.constant 0 : i32
    return %c0_i32, %c0_i32_0 : i32, i32
  }
  func.func @transform_3(%arg0: i32, %arg1: i32) -> (i32, i32) {
    %c0_i32 = arith.constant 0 : i32
    %c0_i32_0 = arith.constant 0 : i32
    %c0_i32_1 = arith.constant 0 : i32
    return %c0_i32, %c0_i32_0 : i32, i32
  }
  func.func @transform_4(%arg0: i32, %arg1: i32) -> (i32, i32) {
    %c0_i32 = arith.constant 0 : i32
    %c0_i32_0 = arith.constant 0 : i32
    %c0_i32_1 = arith.constant 0 : i32
    return %c0_i32, %c0_i32_0 : i32, i32
  }
}

</mosaic_0001>

<bundles_post_ra>
// kernel: tpu_custom_call.1
= control target key start
LH: loop header
LB: loop body
LE: loop exit
PB: predicated region body
PF: predicated region fallthrough
CT: control target
= control target key end

     0   :  { %9 = vsyncpa [#allocation4], 0  ;;  %s565_s0 = inlined_call_operand.hbm [shape: f32[2,64,256], index: 0, kind: input, shape index: {}]   ;;  %s566_s1 = inlined_call_operand.hbm [shape: f32[64,128], index: 1, kind: input, shape index: {}]   ;;  %s567_s2 = inlined_call_operand.vmem [shape: f32[1,128], index: 2, kind: input, shape index: {}]   ;;  %s568_s3 = inlined_call_operand.vmem [shape: f32[1,128], index: 3, kind: input, shape index: {}]   ;;  %s569_s4 = inlined_call_operand.hbm [shape: f32[2,128], index: 4, kind: output, shape index: {}]  }
   0x1   :  { %10 = vsyncpa [#allocation7], 0 }
   0x2   :  { %11 = vsyncpa [#allocation5], 0  ;;  %s495_s15 = smov [#allocation3]  }
   0x3   :  { %s17_s16 = sshll.u32 %s495_s15, 4  ;;  %s18_s16 = int_to_ptr.vmem [resolvable:$true] %s17_s16 }
   0x4   :  { %s437_s17 = scalar_lea.vmem %s18_s16, 4096  ;;  %p442_p1 = scmp.lt.s32.totalorder %s18_s16, %s18_s16 }
   0x5   :  { %p438_p0 = scmp.ne.s32.totalorder %s18_s16, %s437_s17  ;;  %p443_p2 = scmp.lt.s32.totalorder %s437_s17, %s437_s17 }
   0x7   :  { %p444_p3 = por %p443_p2, %p442_p1 }
   0x9   :  { %p445_p4 = pnand %p444_p3, %p438_p0 }
   0xb   :  { %448 = shalt.err (!%p445_p4)
}
   0xc   :  { %s496_s18 = smov 256   ;;  %s497_s19 = smov 16  }
   0xd   :  { %23 = dma.hbm_to_vmem [thread:$0]  %s565_s0, 4096, %s18_s16, [#allocation4], %s496_s18, %s496_s18, %s497_s19  }
   0xe   :  { %s498_s22 = smov [#allocation6]  }
   0xf   :  { %s29_s23 = sshll.u32 %s498_s22, 4  ;;  %s30_s23 = int_to_ptr.vmem [resolvable:$true] %s29_s23 }
  0x10   :  { %s457_s24 = scalar_lea.vmem %s30_s23, 1024  ;;  %p462_p6 = scmp.lt.s32.totalorder %s30_s23, %s30_s23 }
  0x11   :  { %p458_p5 = scmp.ne.s32.totalorder %s30_s23, %s457_s24  ;;  %p463_p7 = scmp.lt.s32.totalorder %s457_s24, %s457_s24 }
  0x13   :  { %p464_p8 = por %p463_p7, %p462_p6 }
  0x15   :  { %p465_p9 = pnand %p464_p8, %p458_p5 }
  0x17   :  { %468 = shalt.err (!%p465_p9)
}
  0x18   :  { %s499_s25 = smov 128   ;;  %s500_s26 = smov 8  }
  0x19   :  { %35 = dma.hbm_to_vmem [thread:$0]  %s566_s1, 1024, %s30_s23, [#allocation7], %s499_s25, %s499_s25, %s500_s26  }
  0x1a   :  { %489 = dma.done.wait [#allocation4], 4096  }
  0x1b   :  { %490 = vsyncadd [#allocation4], 4294963200 }
  0x1c   :  { %491 = dma.done.wait [#allocation7], 1024  }
  0x1d   :  { %492 = vsyncadd [#allocation7], 4294966272  ;;  %v62_v0 = vld [vmem:[#allocation3 + $0x80] sm:$0xff]  ;;  %v63_v1 = vld [vmem:[#allocation3 + $0x88] sm:$0xff]  ;;  %v501_v48 = vmov 0.0   ;;  %vm502_vm0 = vmmov 0   ;;  %v150_v61 = vlaneseq }
  0x1e   :  { %v46_v2 = vld [vmem:[#allocation3] sm:$0xff]  ;;  %v102_v3 = vadd.f32 %v63_v1, %v62_v0  ;;  %v47_v4 = vld [vmem:[#allocation3 + $0x8] sm:$0xff]  ;;  %v64_v5 = vld [vmem:[#allocation3 + $0x90] sm:$0xff]  ;;  %399 = vmatprep.subr.mxu0 %v501_v48  ;;  %415 = vmatprep.mubr.msk.f32.mxu0 %vm502_vm0, %v501_v48  ;;  %vm161_vm1 = vcmask 130112   ;;  %vm168_vm2 = vcmask 195712   ;;  %vm175_vm3 = vcmask 261312  }
  0x1f   :  { %v65_v6 = vld [vmem:[#allocation3 + $0x98] sm:$0xff]  ;;  %v78_v7 = vadd.f32 %v47_v4, %v46_v2  ;;  %v48_v8 = vld [vmem:[#allocation3 + $0x10] sm:$0xff]  ;;  %v66_v12 = vld [vmem:[#allocation3 + $0xa0] sm:$0xff]  ;;  %v151_v0 = vand.u32 127, %v150_v61  ;;  %vm182_vm4 = vcmask 326912   ;;  %vm189_vm5 = vcmask 392512  }
  0x20   :  { %v49_v9 = vld [vmem:[#allocation3 + $0x18] sm:$0xff]  ;;  %103 = vadd.xlane.f32.xlu1 %v102_v3  ;;  %v105_v10 = vadd.f32 %v65_v6, %v64_v5  ;;  %v67_v13 = vld [vmem:[#allocation3 + $0xa8] sm:$0xff]  ;;  %v50_v14 = vld [vmem:[#allocation3 + $0x20] sm:$0xff]  ;;  %v535_v5 = vshrl.u32 %v150_v61, 7  ;;  %vm196_vm6 = vcmask 458112   ;;  %vm203_vm7 = vcmask 523712  }
  0x21   :  { %79 = vadd.xlane.f32.xlu0 %v78_v7  ;;  %v81_v11 = vadd.f32 %v49_v9, %v48_v8  ;;  %v51_v15 = vld [vmem:[#allocation3 + $0x28] sm:$0xff]  ;;  %v108_v16 = vadd.f32 %v67_v13, %v66_v12  ;;  %v68_v18 = vld [vmem:[#allocation3 + $0xb0] sm:$0xff]  ;;  %v69_v19 = vld [vmem:[#allocation3 + $0xb8] sm:$0xff]  ;;  %v156_v2 = vadd.s32 4294967288, %v151_v0  ;;  %v163_v4 = vadd.s32 4294967280, %v151_v0  ;;  %s503_s5 = smov [#allocation8]  }
  0x22   :  { %v84_v17 = vadd.f32 %v51_v15, %v50_v14  ;;  %v52_v20 = vld [vmem:[#allocation3 + $0x30] sm:$0xff]  ;;  %v53_v21 = vld [vmem:[#allocation3 + $0x38] sm:$0xff]  ;;  %v111_v22 = vadd.f32 %v69_v19, %v68_v18  ;;  %v70_v24 = vld [vmem:[#allocation3 + $0xc0] sm:$0xff]  ;;  %v170_v6 = vadd.s32 4294967272, %v151_v0  ;;  %v177_v7 = vadd.s32 4294967264, %v151_v0  ;;  %s378_s6 = sshll.u32 %s503_s5, 4  ;;  %s379_s6 = int_to_ptr.vmem [resolvable:$true] %s378_s6 }
  0x23   :  { %v87_v23 = vadd.f32 %v53_v21, %v52_v20  ;;  %v71_v25 = vld [vmem:[#allocation3 + $0xc8] sm:$0xff]  ;;  %v54_v26 = vld [vmem:[#allocation3 + $0x40] sm:$0xff]  ;;  %v72_v30 = vld [vmem:[#allocation3 + $0xd0] sm:$0xff]  ;;  %v159_v9 = vsub.s32 %v156_v2, %v535_v5  ;;  %v166_v12 = vsub.s32 %v163_v4, %v535_v5  ;;  %v191_v13 = vadd.s32 4294967248, %v151_v0  ;;  %s469_s7 = scalar_lea.vmem %s379_s6, 32  ;;  %p474_p11 = scmp.lt.s32.totalorder %s379_s6, %s379_s6 }
  0x24   :  { %106 = vadd.xlane.f32.xlu1 %v105_v10  ;;  %v55_v27 = vld [vmem:[#allocation3 + $0x48] sm:$0xff]  ;;  %v114_v28 = vadd.f32 %v71_v25, %v70_v24  ;;  %v73_v31 = vld [vmem:[#allocation3 + $0xd8] sm:$0xff]  ;;  %v56_v32 = vld [vmem:[#allocation3 + $0x50] sm:$0xff]  ;;  %v154_v14 = vsub.s32 %v151_v0, %v535_v5  ;;  %v173_v15 = vsub.s32 %v170_v6, %v535_v5  ;;  %v198_v21 = vadd.s32 4294967240, %v151_v0  ;;  %p470_p10 = scmp.ne.s32.totalorder %s379_s6, %s469_s7  ;;  %p475_p12 = scmp.lt.s32.totalorder %s469_s7, %s469_s7 }
  0x25   :  { %82 = vadd.xlane.f32.xlu0 %v81_v11  ;;  %v90_v29 = vadd.f32 %v55_v27, %v54_v26  ;;  %v57_v33 = vld [vmem:[#allocation3 + $0x58] sm:$0xff]  ;;  %v117_v34 = vadd.f32 %v73_v31, %v72_v30  ;;  %v74_v36 = vld [vmem:[#allocation3 + $0xe0] sm:$0xff]  ;;  %v75_v37 = vld [vmem:[#allocation3 + $0xe8] sm:$0xff]  ;;  %v184_v11 = vadd.s32 4294967256, %v151_v0  ;;  %v194_v24 = vsub.s32 %v191_v13, %v535_v5 }
  0x26   :  { %v93_v35 = vadd.f32 %v57_v33, %v56_v32  ;;  %v58_v38 = vld [vmem:[#allocation3 + $0x60] sm:$0xff]  ;;  %v59_v39 = vld [vmem:[#allocation3 + $0x68] sm:$0xff]  ;;  %v120_v40 = vadd.f32 %v75_v37, %v74_v36  ;;  %v76_v42 = vld [vmem:[#allocation3 + $0xf0] sm:$0xff]  ;;  %v201_v36 = vsub.s32 %v198_v21, %v535_v5  ;;  %vm244_vm8 = vcmask 1041409   ;;  %p476_p13 = por %p475_p12, %p474_p11 }
  0x27   :  { %v96_v41 = vadd.f32 %v59_v39, %v58_v38  ;;  %v77_v43 = vld [vmem:[#allocation3 + $0xf8] sm:$0xff]  ;;  %v60_v44 = vld [vmem:[#allocation3 + $0x70] sm:$0xff]  ;;  %v131_v51 = vld [vmem:[#allocation6 + $0x28] sm:$0xff]  ;;  %v187_v19 = vsub.s32 %v184_v11, %v535_v5  ;;  %vm246_vm9 = vcmask 523264   ;;  %vm332_vm10 = vcmask 1041408  }
  0x28   :  { %109 = vadd.xlane.f32.xlu1 %v108_v16  ;;  %v61_v45 = vld [vmem:[#allocation3 + $0x78] sm:$0xff]  ;;  %v123_v46 = vadd.f32 %v77_v43, %v76_v42  ;;  %v132_v50 = vld [vmem:[#allocation6 + $0x30] sm:$0xff]  ;;  %v130_v52 = vld [vmem:[#allocation6 + $0x20] sm:$0xff]  ;;  %v180_v16 = vsub.s32 %v177_v7, %v535_v5  ;;  %p477_p0 = pnand %p476_p13, %p470_p10 }
  0x29   :  { %85 = vadd.xlane.f32.xlu0 %v84_v17  ;;  %v99_v47 = vadd.f32 %v61_v45, %v60_v44  ;;  %v133_v49 = vld [vmem:[#allocation6 + $0x38] sm:$0xff]  ;;  %v128_v54 = vld [vmem:[#allocation6 + $0x10] sm:$0xff]  ;;  %v127_v55 = vld [vmem:[#allocation6 + $0x8] sm:$0xff] }
  0x2a   :  { %400 = vmatpush3.msra.mxu0 %v133_v49  ;;  %v129_v53 = vld [vmem:[#allocation6 + $0x18] sm:$0xff]  ;;  %v126_v56 = vld [vmem:[#allocation6] sm:$0xff] }
  0x2b   :  { %401 = vmatprep.subr.mxu0 %v501_v48 }
  0x2c   :  { %112 = vadd.xlane.f32.xlu1 %v111_v22  ;;  %402 = vmatpush3.msra.mxu0 %v132_v50 }
  0x2d   :  { %88 = vadd.xlane.f32.xlu0 %v87_v23  ;;  %403 = vmatprep.subr.mxu0 %v501_v48 }
  0x2e   :  { %404 = vmatpush3.msra.mxu0 %v131_v51 }
  0x2f   :  { %405 = vmatprep.subr.mxu0 %v501_v48 }
  0x30   :  { %115 = vadd.xlane.f32.xlu1 %v114_v28  ;;  %406 = vmatpush3.msra.mxu0 %v130_v52 }
  0x31   :  { %91 = vadd.xlane.f32.xlu0 %v90_v29  ;;  %407 = vmatprep.subr.mxu0 %v501_v48 }
  0x32   :  { %408 = vmatpush3.msra.mxu0 %v129_v53 }
  0x33   :  { %409 = vmatprep.subr.mxu0 %v501_v48 }
  0x34   :  { %118 = vadd.xlane.f32.xlu1 %v117_v34  ;;  %410 = vmatpush3.msra.mxu0 %v128_v54 }
  0x35   :  { %94 = vadd.xlane.f32.xlu0 %v93_v35  ;;  %411 = vmatprep.subr.mxu0 %v501_v48 }
  0x36   :  { %412 = vmatpush3.msra.mxu0 %v127_v55 }
  0x37   :  { %413 = vmatprep.subr.mxu0 %v501_v48 }
  0x38   :  { %121 = vadd.xlane.f32.xlu1 %v120_v40  ;;  %414 = vmatpush3.msra.mxu0 %v126_v56 }
  0x39   :  { %97 = vadd.xlane.f32.xlu0 %v96_v41 }
  0x3c   :  { %124 = vadd.xlane.f32.xlu1 %v123_v46 }
  0x3d   :  { %100 = vadd.xlane.f32.xlu0 %v99_v47 }
  0xa9   :  { %v104_v57 = vpop.xlane.xlu1 %103 }
  0xaa   :  { %v80_v58 = vpop.xlane.xlu0 %79  ;;  %v208_v25 = vrot.slane %v104_v57, %v154_v14 }
  0xab   :  { %v155_v28 = vrot.slane %v80_v58, %v154_v14 }
  0xad   :  { %v107_v59 = vpop.xlane.xlu1 %106 }
  0xae   :  { %v83_v60 = vpop.xlane.xlu0 %82  ;;  %v212_v18 = vrot.slane %v107_v59, %v159_v9 }
  0xaf   :  { %v160_v22 = vrot.slane %v83_v60, %v159_v9 }
  0xb0   :  { %v213_v32 = vsel %vm161_vm1, %v212_v18, %v208_v25  ;;  %v352_v18 = vld [vmem:[%s567_s2] sm:$0x1] }
  0xb1   :  { %v110_v62 = vpop.xlane.xlu1 %109  ;;  %v162_v37 = vsel %vm161_vm1, %v160_v22, %v155_v28 }
  0xb2   :  { %v86_v63 = vpop.xlane.xlu0 %85  ;;  %v217_v23 = vrot.slane %v110_v62, %v166_v12 }
  0xb3   :  { %v167_v26 = vrot.slane %v86_v63, %v166_v12 }
  0xb4   :  { %v218_v38 = vsel %vm168_vm2, %v217_v23, %v213_v32  ;;  %v389_v23 = vld [vmem:[%s568_s3] ss:$0 sm:$0xff] }
  0xb5   :  { %v113_v1 = vpop.xlane.xlu1 %112  ;;  %v169_v41 = vsel %vm168_vm2, %v167_v26, %v162_v37 }
  0xb6   :  { %v89_v3 = vpop.xlane.xlu0 %88  ;;  %v222_v27 = vrot.slane %v113_v1, %v173_v15 }
  0xb7   :  { %v174_v29 = vrot.slane %v89_v3, %v173_v15 }
  0xb8   :  { %v223_v42 = vsel %vm175_vm3, %v222_v27, %v218_v38 }
  0xb9   :  { %v116_v8 = vpop.xlane.xlu1 %115  ;;  %v176_v44 = vsel %vm175_vm3, %v174_v29, %v169_v41 }
  0xba   :  { %v92_v10 = vpop.xlane.xlu0 %91  ;;  %v227_v30 = vrot.slane %v116_v8, %v180_v16 }
  0xbb   :  { %v181_v33 = vrot.slane %v92_v10, %v180_v16 }
  0xbc   :  { %v228_v45 = vsel %vm182_vm4, %v227_v30, %v223_v42 }
  0xbd   :  { %v119_v17 = vpop.xlane.xlu1 %118  ;;  %v183_v47 = vsel %vm182_vm4, %v181_v33, %v176_v44 }
  0xbe   :  { %v95_v20 = vpop.xlane.xlu0 %94  ;;  %v232_v34 = vrot.slane %v119_v17, %v187_v19 }
  0xbf   :  { %v188_v39 = vrot.slane %v95_v20, %v187_v19  ;;  %v359_v19 = vsub.s32 0, %v535_v5 }
  0xc0   :  { %v233_v48 = vsel %vm189_vm5, %v232_v34, %v228_v45 }
  0xc1   :  { %v122_v31 = vpop.xlane.xlu1 %121  ;;  %v190_v51 = vsel %vm189_vm5, %v188_v39, %v183_v47 }
  0xc2   :  { %v98_v35 = vpop.xlane.xlu0 %97  ;;  %v237_v40 = vrot.slane %v122_v31, %v194_v24 }
  0xc3   :  { %v195_v43 = vrot.slane %v98_v35, %v194_v24 }
  0xc4   :  { %v238_v52 = vsel %vm196_vm6, %v237_v40, %v233_v48 }
  0xc5   :  { %v125_v46 = vpop.xlane.xlu1 %124  ;;  %v197_v54 = vsel %vm196_vm6, %v195_v43, %v190_v51 }
  0xc6   :  { %v242_v49 = vrot.slane %v125_v46, %v201_v36  ;;  %v101_v50 = vpop.xlane.xlu0 %100 }
  0xc7   :  { %v202_v53 = vrot.slane %v101_v50, %v201_v36 }
  0xc8   :  { %v243_v55 = vsel %vm203_vm7, %v242_v49, %v238_v52 }
  0xc9   :  { %v204_v56 = vsel %vm203_vm7, %v202_v53, %v197_v54 }
  0xca   :  { %v245_v57 = vsel %vm244_vm8, %v243_v55, %v204_v56 }
  0xcb   :  { %416 = vmatmul.mubr.msk.f32.vlgmr.msra.gmra.mxu0 %vm246_vm9, %v245_v57 }
 0x18b   :  { %v315_v58 = vpop.f32.mrf.mxu0 }
 0x18c   :  { %323 = vst [vmem:[#allocation2] sm:$0x3] %v315_v58 }
 0x18d   :  { %v417_v59 = vpop.f32.mrf.mxu0 }
 0x193   :  { %v324_v60 = vld [vmem:[#allocation2] sm:$0x3] }
 0x194   :  { %325 = vst [vmem:[#allocation8] sm:$0x3] %v324_v60 }
 0x19b   :  { %v331_v61 = vld [vmem:[#allocation8] sm:$0x3] }
 0x19c   :  { %v333_v62 = vsel %vm332_vm10, %v331_v61, 0.0 }
 0x19d   :  { %v334_v63 = vrot.slane %v333_v62, 4 }
 0x19f   :  { %v335_v0 = vadd.f32 %v334_v63, %v333_v62 }
 0x1a1   :  { %v336_v1 = vrot.slane %v335_v0, 2 }
 0x1a3   :  { %v337_v2 = vadd.f32 %v336_v1, %v335_v0 }
 0x1a5   :  { %v338_v3 = vrot.slane %v337_v2, 1 }
 0x1a7   :  { %v339_v4 = vadd.f32 %v338_v3, %v337_v2 }
 0x1a9   :  { %v341_v6 = vmul.f32 0.5, %v339_v4 }
 0x1ab   :  { %v342_v7 = vsub.f32 %v331_v61, %v341_v6 }
 0x1ad   :  { %v343_v8 = vmul.f32 %v342_v7, %v342_v7 }
 0x1af   :  { %v344_v9 = vsel %vm332_vm10, %v343_v8, 0.0 }
 0x1b0   :  { %v345_v10 = vrot.slane %v344_v9, 4 }
 0x1b2   :  { %v346_v11 = vadd.f32 %v345_v10, %v344_v9 }
 0x1b4   :  { %v347_v12 = vrot.slane %v346_v11, 2 }
 0x1b6   :  { %v348_v13 = vadd.f32 %v347_v12, %v346_v11 }
 0x1b8   :  { %v349_v14 = vrot.slane %v348_v13, 1 }
 0x1ba   :  { %v350_v15 = vadd.f32 %v349_v14, %v348_v13 }
 0x1bc   :  { %v351_v16 = vmul.f32 0.5, %v350_v15 }
 0x1be   :  { %v353_v17 = vadd.f32 1e-05, %v351_v16 }
 0x1c0   :  { %427 = vrsqrt.f32 %v353_v17 }
 0x1cd   :  { %v428_v20 = vpop.eup %427 }
 0x1ce   :  { %v355_v21 = vmul.f32 %v428_v20, %v352_v18 }
 0x1d0   :  { %v360_v22 = vrot.slane %v355_v21, %v359_v19 }
 0x1d2   :  { %v362_v24 = vmul.f32 %v360_v22, %v342_v7 }
 0x1d4   :  { %v370_v25 = vadd.f32 %v389_v23, %v362_v24 }
 0x1d6   :  { %371 = vst [vmem:[#allocation8] sm:$0x3] %v370_v25 }
 0x1d7   :  { %480 = shalt.err (!%p477_p0)
}
 0x1d8   :  { %381 = dma.vmem_to_hbm [thread:$0]  %s379_s6, 32, %s569_s4, [#allocation5]  }
 0x1d9   :  { %493 = dma.done.wait [#allocation5], 32  }
 0x1da   :  { %494 = vsyncadd [#allocation5], 4294967264 }
 0x1db   :  { %385 = vsyncpa [#allocation4], 1 }
 0x1dc   :  { %386 = vsyncpa [#allocation7], 1 }
 0x1dd   :  { %387 = vsyncpa [#allocation5], 1 }

</bundles_post_ra>
